<compile_context>
chip_gen: v7x
topology: tpu7x:2x2x1
jax: 0.10.0
libtpu: 0.0.40
codegen_flags: <defaults>
</compile_context>

<pallas_src>
import functools

import jax
import jax.numpy as jnp
from jax.experimental import pallas as pl
from jax.experimental.pallas import tpu as pltpu


def _round_up(x, m):
    return ((x + m - 1) // m) * m


def _pick_tm(n_tokens, hidden, cbytes, obytes, budget_bytes=16 * 1024 * 1024):
    """Row tile: multiple of 16 (bf16 sublane packing), sized against VMEM budget."""
    # Per-row VMEM cost: double-buffered x tile, double-buffered out tile, f32 acc.
    per_row = hidden * (2 * cbytes + 2 * obytes + 4)
    tm_max = max(16, (budget_bytes // max(per_row, 1) // 16) * 16)
    tm = min(512, tm_max, _round_up(max(n_tokens, 1), 16))
    return tm


def _pick_tf(ffn, hidden, cbytes, budget_bytes=28 * 1024 * 1024):
    """ffn tile: largest multiple-of-128 divisor of ffn whose W1+W2 tiles
    (double-buffered) fit in the weight budget; full ffn for non-128 dims."""
    if ffn % 128 != 0:
        return ffn
    # 2 weight operands x 2 pipeline buffers x (hidden * tf) elements.
    tf_max = budget_bytes // max(4 * hidden * cbytes, 1)
    tf_max = max(128, min(ffn, (tf_max // 128) * 128))
    for tf in range(tf_max, 127, -128):
        if ffn % tf == 0:
            return tf
    return 128 if ffn % 128 == 0 else ffn


def _ffn_kernel(x_ref, w1_ref, b1_ref, w2_ref, b2_ref, o_ref, acc_ref):
    k = pl.program_id(1)

    @pl.when(k == 0)
    def _():
        # Fold the fc2 bias into the accumulator init (saves a [tm, hidden] VPU pass).
        acc_ref[...] = jnp.broadcast_to(
            b2_ref[...].astype(jnp.float32), acc_ref.shape
        )

    # fc1 partial: [tm, H] @ [H, tf] -> [tm, tf], f32 accumulation on the MXU.
    h = jnp.dot(x_ref[...], w1_ref[...], preferred_element_type=jnp.float32)
    # Bias + ReLU in f32 (elementwise columns partition exactly across ffn tiles).
    h = h + b1_ref[...].astype(jnp.float32)
    h = jnp.maximum(h, 0.0)

    # fc2 partial: [tm, tf] @ [tf, H], accumulated into the resident f32 scratch.
    acc_ref[...] += jnp.dot(
        h.astype(w2_ref.dtype), w2_ref[...], preferred_element_type=jnp.float32
    )

    @pl.when(k == pl.num_programs(1) - 1)
    def _():
        o_ref[...] = acc_ref[...].astype(o_ref.dtype)


@functools.partial(jax.jit, static_argnames=("tm", "tf", "compute_dtype"))
def feed_forward(x, w1, b1, w2, b2, *, tm=None, tf=None, compute_dtype=jnp.bfloat16):
    """x: [..., hidden]; w1: [hidden, ffn]; b1: [ffn]; w2: [ffn, hidden]; b2: [hidden]."""
    hidden = x.shape[-1]
    ffn = w1.shape[1]
    lead_shape = x.shape[:-1]
    out_dtype = x.dtype

    cbytes = jnp.dtype(compute_dtype).itemsize
    obytes = jnp.dtype(out_dtype).itemsize

    x2d = x.reshape(-1, hidden)
    if x2d.dtype != compute_dtype:
        x2d = x2d.astype(compute_dtype)
    n_tokens = x2d.shape[0]

    if tm is None:
        tm = _pick_tm(n_tokens, hidden, cbytes, obytes)
    n_pad = _round_up(n_tokens, tm)
    if n_pad != n_tokens:
        x2d = jnp.pad(x2d, ((0, n_pad - n_tokens), (0, 0)))

    if tf is None:
        tf = _pick_tf(ffn, hidden, cbytes)

    w1c = w1.astype(compute_dtype)
    w2c = w2.astype(compute_dtype)
    b1_2d = b1.reshape(1, ffn).astype(jnp.float32)
    b2_2d = b2.reshape(1, hidden).astype(jnp.float32)

    grid = (n_pad // tm, ffn // tf)

    # Explicit VMEM budget (double-buffered inputs/outputs + f32 accumulator).
    vmem_budget = (
        2 * tm * hidden * cbytes        # x tile
        + 2 * hidden * tf * cbytes      # W1 tile
        + 2 * tf * hidden * cbytes      # W2 tile
        + 2 * (tf + hidden) * 4         # biases
        + tm * hidden * 4               # f32 accumulator scratch
        + 2 * tm * hidden * obytes      # output tile
    )
    # Headroom, but stay within the smallest physical VMEM (v7x: 64 MiB/TC).
    vmem_limit = int(min(max(2 * vmem_budget, 32 * 1024 * 1024), 64 * 1024 * 1024))

    n_i_tiles = n_pad // tm
    flops = 4 * n_pad * hidden * ffn  # two matmuls, 2*M*K*N each
    bytes_accessed = (
        n_pad * hidden * cbytes                      # x read
        + n_i_tiles * 2 * hidden * ffn * cbytes      # W1 + W2 streamed per row tile
        + (ffn + hidden) * 4                         # biases
        + n_pad * hidden * obytes                    # output write
    )

    out = pl.pallas_call(
        _ffn_kernel,
        out_shape=jax.ShapeDtypeStruct((n_pad, hidden), out_dtype),
        grid_spec=pltpu.PrefetchScalarGridSpec(
            num_scalar_prefetch=0,
            grid=grid,
            in_specs=[
                pl.BlockSpec((tm, hidden), lambda i, k: (i, 0)),   # x tile
                pl.BlockSpec((hidden, tf), lambda i, k: (0, k)),   # W1 (ffn-tiled)
                pl.BlockSpec((1, tf), lambda i, k: (0, k)),        # b1 (ffn-tiled)
                pl.BlockSpec((tf, hidden), lambda i, k: (k, 0)),   # W2 (ffn-tiled)
                pl.BlockSpec((1, hidden), lambda i, k: (0, 0)),    # b2
            ],
            out_specs=pl.BlockSpec((tm, hidden), lambda i, k: (i, 0)),
            scratch_shapes=[pltpu.VMEM((tm, hidden), jnp.float32)],
        ),
        compiler_params=pltpu.CompilerParams(
            dimension_semantics=("parallel", "arbitrary"),
            vmem_limit_bytes=vmem_limit,
        ),
        cost_estimate=pl.CostEstimate(
            flops=flops, transcendentals=0, bytes_accessed=bytes_accessed
        ),
    )(x2d, w1c, b1_2d, w2c, b2_2d)

    out = out[:n_tokens]
    return out.reshape(*lead_shape, hidden)


def _ref_ffn(x, w1, b1, w2, b2):
    return jnp.maximum(x @ w1 + b1, 0.0) @ w2 + b2


if __name__ == "__main__":
    # --- small demo config matching the module spec ---
    hidden_dim = 32
    ffn_dim = 64
    batch, seq = 2, 8

    key = jax.random.PRNGKey(0)
    kx, kw1, kb1, kw2, kb2 = jax.random.split(key, 5)

    # PyTorch Linear stores weight as [out, in]; we pass the transpose [in, out].
    x = jax.random.normal(kx, (batch, seq, hidden_dim), dtype=jnp.float32)
    w1 = jax.random.normal(kw1, (hidden_dim, ffn_dim), dtype=jnp.float32) * 0.05
    b1 = jax.random.normal(kb1, (ffn_dim,), dtype=jnp.float32) * 0.05
    w2 = jax.random.normal(kw2, (ffn_dim, hidden_dim), dtype=jnp.float32) * 0.05
    b2 = jax.random.normal(kb2, (hidden_dim,), dtype=jnp.float32) * 0.05

    out = feed_forward(x, w1, b1, w2, b2)
    jax.block_until_ready(out)
    ref = _ref_ffn(x, w1, b1, w2, b2)
    assert out.shape == (batch, seq, hidden_dim)
    # bf16 MXU operands -> loose tolerance vs f32 reference.
    assert jnp.allclose(out, ref, atol=2e-2, rtol=2e-2), "mismatch vs reference (small)"

    # --- second config: ragged token count + multi-step ffn reduction axis ---
    hidden2, ffn2 = 128, 2048
    batch2, seq2 = 4, 37  # 148 tokens -> padded to a multiple of the row tile
    k2 = jax.random.split(jax.random.PRNGKey(0), 5)
    x_b = jax.random.normal(k2[0], (batch2, seq2, hidden2), dtype=jnp.float32)
    w1_b = jax.random.normal(k2[1], (hidden2, ffn2), dtype=jnp.float32) * 0.02
    b1_b = jax.random.normal(k2[2], (ffn2,), dtype=jnp.float32) * 0.02
    w2_b = jax.random.normal(k2[3], (ffn2, hidden2), dtype=jnp.float32) * 0.02
    b2_b = jax.random.normal(k2[4], (hidden2,), dtype=jnp.float32) * 0.02

    # Force a multi-step reduction axis to exercise the accumulator path.
    out_b = feed_forward(x_b, w1_b, b1_b, w2_b, b2_b, tf=512)
    jax.block_until_ready(out_b)
    ref_b = _ref_ffn(x_b, w1_b, b1_b, w2_b, b2_b)
    assert out_b.shape == (batch2, seq2, hidden2)
    assert jnp.allclose(out_b, ref_b, atol=5e-2, rtol=5e-2), "mismatch vs reference (large)"

    print("KERNEL_OK")
</pallas_src>

<mosaic_0001>
module attributes {stable_mosaic.version = 11 : i64} {
  func.func @_ffn_kernel(%arg0: i32, %arg1: i32, %arg2: memref<16x32xbf16, #tpu.memory_space<vmem>>, %arg3: memref<32x64xbf16, #tpu.memory_space<vmem>>, %arg4: memref<1x64xf32, #tpu.memory_space<vmem>>, %arg5: memref<64x32xbf16, #tpu.memory_space<vmem>>, %arg6: memref<1x32xf32, #tpu.memory_space<vmem>>, %arg7: memref<16x32xf32, #tpu.memory_space<vmem>>, %arg8: memref<16x32xf32, #tpu.memory_space<vmem>>) attributes {dimension_semantics = [#tpu.dimension_semantics<parallel>, #tpu.dimension_semantics<arbitrary>], iteration_bounds = array<i64: 1, 1>, scalar_prefetch = 0 : i64, scratch_operands = 1 : i64, tpu.core_type = #tpu.core_type<tc>, window_params = [{transform_indices = @transform_0, window_bounds = array<i64: 16, 32>}, {transform_indices = @transform_1, window_bounds = array<i64: 32, 64>}, {transform_indices = @transform_2, window_bounds = array<i64: 1, 64>}, {transform_indices = @transform_3, window_bounds = array<i64: 64, 32>}, {pipeline_mode = #tpu.pipeline_mode<synchronous>, transform_indices = @transform_4, window_bounds = array<i64: 1, 32>}, {transform_indices = @transform_5, window_bounds = array<i64: 16, 32>}]} {
    %c0_i32 = arith.constant 0 : i32
    %0 = arith.cmpi eq, %arg1, %c0_i32 : i32
    %1 = arith.extui %0 : i1 to i32
    %c0_i32_0 = arith.constant 0 : i32
    %2 = arith.cmpi ne, %1, %c0_i32_0 : i32
    scf.if %2 {
      %c0_16 = arith.constant 0 : index
      %c0_17 = arith.constant 0 : index
      %20 = vector.load %arg6[%c0_16, %c0_17] : memref<1x32xf32, #tpu.memory_space<vmem>>, vector<1x32xf32>
      %21 = vector.shape_cast %20 : vector<1x32xf32> to vector<1x32xf32>
      %22 = vector.broadcast %21 : vector<1x32xf32> to vector<16x32xf32>
      %c0_18 = arith.constant 0 : index
      %c0_19 = arith.constant 0 : index
      %23 = vector.load %arg8[%c0_18, %c0_19] : memref<16x32xf32, #tpu.memory_space<vmem>>, vector<16x32xf32>
      tpu.vector_store %arg8[%c0_18, %c0_19], %22 {strides = array<i32>} : memref<16x32xf32, #tpu.memory_space<vmem>>, vector<16x32xf32>,
    } else {
    }
    %c0 = arith.constant 0 : index
    %c0_1 = arith.constant 0 : index
    %3 = vector.load %arg2[%c0, %c0_1] : memref<16x32xbf16, #tpu.memory_space<vmem>>, vector<16x32xbf16>
    %c0_2 = arith.constant 0 : index
    %c0_3 = arith.constant 0 : index
    %4 = vector.load %arg3[%c0_2, %c0_3] : memref<32x64xbf16, #tpu.memory_space<vmem>>, vector<32x64xbf16>
    %cst = arith.constant dense<0.000000e+00> : vector<16x64xf32>
    %5 = tpu.matmul %3, %4, %cst {dimension_numbers = #tpu.dot_dimension_numbers<[1], [0], [0], [1], [0, 0, 1, 1], [], []>} : vector<16x32xbf16>, vector<32x64xbf16>, vector<16x64xf32> -> vector<16x64xf32>
    %c0_4 = arith.constant 0 : index
    %c0_5 = arith.constant 0 : index
    %6 = vector.load %arg4[%c0_4, %c0_5] : memref<1x64xf32, #tpu.memory_space<vmem>>, vector<1x64xf32>
    %7 = vector.broadcast %6 : vector<1x64xf32> to vector<16x64xf32>
    %8 = arith.addf %5, %7 : vector<16x64xf32>
    %cst_6 = arith.constant 0.000000e+00 : f32
    %9 = vector.broadcast %cst_6 : f32 to vector<16x64xf32>
    %10 = arith.maximumf %8, %9 : vector<16x64xf32>
    %c0_7 = arith.constant 0 : index
    %c0_8 = arith.constant 0 : index
    %11 = vector.load %arg8[%c0_7, %c0_8] : memref<16x32xf32, #tpu.memory_space<vmem>>, vector<16x32xf32>
    %12 = arith.truncf %10 : vector<16x64xf32> to vector<16x64xbf16>
    %c0_9 = arith.constant 0 : index
    %c0_10 = arith.constant 0 : index
    %13 = vector.load %arg5[%c0_9, %c0_10] : memref<64x32xbf16, #tpu.memory_space<vmem>>, vector<64x32xbf16>
    %cst_11 = arith.constant dense<0.000000e+00> : vector<16x32xf32>
    %14 = tpu.matmul %12, %13, %cst_11 {dimension_numbers = #tpu.dot_dimension_numbers<[1], [0], [0], [1], [0, 0, 1, 1], [], []>} : vector<16x64xbf16>, vector<64x32xbf16>, vector<16x32xf32> -> vector<16x32xf32>
    %15 = arith.addf %11, %14 : vector<16x32xf32>
    %c0_12 = arith.constant 0 : index
    %c0_13 = arith.constant 0 : index
    %16 = vector.load %arg8[%c0_12, %c0_13] : memref<16x32xf32, #tpu.memory_space<vmem>>, vector<16x32xf32>
    tpu.vector_store %arg8[%c0_12, %c0_13], %15 {strides = array<i32>} : memref<16x32xf32, #tpu.memory_space<vmem>>, vector<16x32xf32>,
    %c0_i32_14 = arith.constant 0 : i32
    %17 = arith.cmpi eq, %arg1, %c0_i32_14 : i32
    %18 = arith.extui %17 : i1 to i32
    %c0_i32_15 = arith.constant 0 : i32
    %19 = arith.cmpi ne, %18, %c0_i32_15 : i32
    scf.if %19 {
      %c0_16 = arith.constant 0 : index
      %c0_17 = arith.constant 0 : index
      %20 = vector.load %arg8[%c0_16, %c0_17] : memref<16x32xf32, #tpu.memory_space<vmem>>, vector<16x32xf32>
      %c0_18 = arith.constant 0 : index
      %c0_19 = arith.constant 0 : index
      %21 = vector.load %arg7[%c0_18, %c0_19] : memref<16x32xf32, #tpu.memory_space<vmem>>, vector<16x32xf32>
      tpu.vector_store %arg7[%c0_18, %c0_19], %20 {strides = array<i32>} : memref<16x32xf32, #tpu.memory_space<vmem>>, vector<16x32xf32>,
    } else {
    }
    return
  }
  func.func @transform_0(%arg0: i32, %arg1: i32) -> (i32, i32) {
    %c0_i32 = arith.constant 0 : i32
    %c0_i32_0 = arith.constant 0 : i32
    return %arg0, %c0_i32 : i32, i32
  }
  func.func @transform_1(%arg0: i32, %arg1: i32) -> (i32, i32) {
    %c0_i32 = arith.constant 0 : i32
    %c0_i32_0 = arith.constant 0 : i32
    return %c0_i32, %arg1 : i32, i32
  }
  func.func @transform_2(%arg0: i32, %arg1: i32) -> (i32, i32) {
    %c0_i32 = arith.constant 0 : i32
    %c0_i32_0 = arith.constant 0 : i32
    return %c0_i32, %arg1 : i32, i32
  }
  func.func @transform_3(%arg0: i32, %arg1: i32) -> (i32, i32) {
    %c0_i32 = arith.constant 0 : i32
    %c0_i32_0 = arith.constant 0 : i32
    return %arg1, %c0_i32 : i32, i32
  }
  func.func @transform_4(%arg0: i32, %arg1: i32) -> (i32, i32) {
    %c0_i32 = arith.constant 0 : i32
    %c0_i32_0 = arith.constant 0 : i32
    %c0_i32_1 = arith.constant 0 : i32
    return %c0_i32, %c0_i32_0 : i32, i32
  }
  func.func @transform_5(%arg0: i32, %arg1: i32) -> (i32, i32) {
    %c0_i32 = arith.constant 0 : i32
    %c0_i32_0 = arith.constant 0 : i32
    return %arg0, %c0_i32 : i32, i32
  }
}

</mosaic_0001>

<bundles_post_ra>
// kernel: feed_forward.1
= control target key start
LH: loop header
LB: loop body
LE: loop exit
PB: predicated region body
PF: predicated region fallthrough
CT: control target
= control target key end

     0   :  { %v295_v1 = vmov 0.0   ;;  %vm296_vm0 = vmmov 0   ;;  %vm33_vm1 = vcmask 261120   ;;  %s376_s0 = inlined_call_operand.vmem [shape: bf16[16,32], index: 0, kind: input, shape index: {}]   ;;  %s377_s1 = inlined_call_operand.vmem [shape: bf16[32,64], index: 1, kind: input, shape index: {}]   ;;  %s378_s2 = inlined_call_operand.vmem [shape: f32[1,64], index: 2, kind: input, shape index: {}]   ;;  %s379_s3 = inlined_call_operand.vmem [shape: bf16[64,32], index: 3, kind: input, shape index: {}]   ;;  %s380_s4 = inlined_call_operand.vmem [shape: f32[1,32], index: 4, kind: input, shape index: {}]   ;;  %s381_s5 = inlined_call_operand.hbm [shape: f32[16,32], index: 5, kind: output, shape index: {}]  }
   0x1   :  { %v264_v0 = vld [vmem:[%s377_s1] sm:$0xff]   ;;  %239 = vmatprep.subr.bf16.mxu0 %v295_v1  ;;  %247 = vmatprep.subr.bf16.mxu1 %v295_v1  ;;  %v265_v2 = vld [vmem:[%s377_s1 + $0x8] sm:$0xff]  }
   0x2   :  { %240 = vmatpush3.bf16.msra.mxu0 %v264_v0  ;;  %243 = vmatprep.mubr.msk.bf16.mxu0 %vm296_vm0, %v295_v1  ;;  %v267_v3 = vld [vmem:[%s379_s3] sm:$0xff]   ;;  %v268_v5 = vld [vmem:[%s379_s3 + $0x8] sm:$0xff]  }
   0x3   :  { %241 = vmatprep.subr.bf16.mxu0 %v295_v1  ;;  %255 = vmatprep.mubr.msk.bf16.mxu1 %vm296_vm0, %v295_v1  ;;  %v266_v4 = vld [vmem:[%s376_s0] sm:$0xff]  }
   0x4   :  { %248 = vmatpush3.bf16.msra.mxu1 %v267_v3 }
   0x5   :  { %249 = vmatprep.subr.bf16.mxu1 %v295_v1 }
   0x6   :  { %242 = vmatpush3.bf16.msra.mxu0 %v265_v2 }
   0x7   :  { %10 = vsyncpa [#allocation4], 0  ;;  %v269_v6 = vld [vmem:[%s379_s3 + $0x10] sm:$0xff]   ;;  %v270_v7 = vld [vmem:[%s379_s3 + $0x18] sm:$0xff]   ;;  %vm148_vm2 = vcmask 523264  }
   0x8   :  { %250 = vmatpush3.bf16.msra.mxu1 %v268_v5  ;;  %v220_v8 = vld [vmem:[%s380_s4] ss:$0 sm:$0xff] }
   0x9   :  { %244 = vmatmul.mubr.msk.bf16.vlgmr.msra.gmra.mrb[0].mxu0 %vm33_vm1, %v266_v4  ;;  %251 = vmatprep.subr.bf16.mxu1 %v295_v1  ;;  %34 = vst.msk [vmem:[#allocation2] sm:$0xff] %vm33_vm1, %v220_v8  ;;  %35 = vst.msk [vmem:[#allocation2 + $0x8] sm:$0xff] %vm33_vm1, %v220_v8  ;;  %v221_v9 = vld [vmem:[%s378_s2] ss:$0 sm:$0xff]  ;;  %s297_s2 = smov [#allocation3]  }
   0xa   :  { %s209_s3 = sshll.u32 %s297_s2, 4  ;;  %s210_s3 = int_to_ptr.vmem [resolvable:$true] %s209_s3 }
   0xb   :  { %s271_s4 = scalar_lea.vmem %s210_s3, 256  ;;  %p276_p1 = scmp.lt.s32.totalorder %s210_s3, %s210_s3 }
   0xc   :  { %252 = vmatpush3.bf16.msra.mxu1 %v269_v6  ;;  %p272_p0 = scmp.ne.s32.totalorder %s210_s3, %s271_s4  ;;  %p277_p2 = scmp.lt.s32.totalorder %s271_s4, %s271_s4 }
   0xd   :  { %253 = vmatprep.subr.bf16.mxu1 %v295_v1 }
   0xe   :  { %p278_p3 = por %p277_p2, %p276_p1 }
  0x10   :  { %254 = vmatpush3.bf16.msra.mxu1 %v270_v7  ;;  %v113_v19 = vld [vmem:[#allocation2] sm:$0xff]  ;;  %v114_v21 = vld [vmem:[#allocation2 + $0x8] sm:$0xff]  ;;  %p279_p4 = pnand %p278_p3, %p272_p0 }
  0xdc   :  { %v104_v10 = vpop.f32.mrb[0].mxu0 }
  0xdd   :  { %v105_v11 = vadd.f32 %v221_v9, %v104_v10  ;;  %v245_v12 = vpop.f32.mrb[1].mxu0 }
  0xde   :  { %v107_v13 = vpop.f32.mrb[2].mxu0 }
  0xdf   :  { %v108_v14 = vadd.f32 %v221_v9, %v107_v13  ;;  %v246_v15 = vpop.f32.mrb[3].mxu0  ;;  %v111_v16 = vmax.f32 %v105_v11, 0.0 }
  0xe1   :  { %v112_v17 = vmax.f32 %v108_v14, 0.0 }
  0xe3   :  { %v115_v18 = vpack.c.bf16 %v112_v17, %v111_v16 }
  0xe5   :  { %256 = vmatmul.mubr.msk.bf16.vlgmr.msra.gmra.mrb[0].mxu1 %vm148_vm2, %v115_v18 }
 0x1b8   :  { %v186_v20 = vpop.f32.mrb[0].mxu1 }
 0x1b9   :  { %v193_v22 = vadd.f32 %v186_v20, %v113_v19  ;;  %v257_v23 = vpop.f32.mrb[1].mxu1 }
 0x1ba   :  { %v189_v24 = vpop.f32.mrb[2].mxu1 }
 0x1bb   :  { %195 = vst.msk [vmem:[#allocation2] sm:$0xff] %vm33_vm1, %v193_v22  ;;  %v194_v25 = vadd.f32 %v189_v24, %v114_v21  ;;  %v258_v26 = vpop.f32.mrb[3].mxu1 }
 0x1bd   :  { %196 = vst.msk [vmem:[#allocation2 + $0x8] sm:$0xff] %vm33_vm1, %v194_v25 }
 0x1c2   :  { %v200_v27 = vld [vmem:[#allocation2] sm:$0xff] }
 0x1c3   :  { %202 = vst.msk [vmem:[#allocation3] sm:$0xff] %vm33_vm1, %v200_v27 }
 0x1c4   :  { %v201_v28 = vld [vmem:[#allocation2 + $0x8] sm:$0xff] }
 0x1c5   :  { %203 = vst.msk [vmem:[#allocation3 + $0x8] sm:$0xff] %vm33_vm1, %v201_v28 }
 0x1c6   :  { %282 = shalt.err (!%p279_p4)
}
 0x1c7   :  { %s283_s11 = scalar_lea.hbm %s381_s5, 256 }
 0x1c8   :  { %p284_p5 = scmp.ne.s32.totalorder %s381_s5, %s283_s11  ;;  %p287_p6 = scmp.lt.u32.totalorder %s283_s11, %s381_s5 }
 0x1ca   :  { %p289_p7 = pnand %p287_p6, %p284_p5 }
 0x1cc   :  { %292 = shalt.err (!%p289_p7)
}
 0x1cd   :  { %s298_s16 = smov 128   ;;  %s299_s17 = smov 8  }
 0x1ce   :  { %215 = dma.vmem_to_hbm [thread:$0]  %s210_s3, 256, %s381_s5, [#allocation4], %s298_s16, %s298_s16, %s299_s17  }
 0x1cf   :  { %293 = dma.done.wait [#allocation4], 256  }
 0x1d0   :  { %294 = vsyncadd [#allocation4], 4294967040 }
 0x1d1   :  { %219 = vsyncpa [#allocation4], 1 }

</bundles_post_ra>
